<compile_context>
chip_gen: v6e
topology: v6e:2x2x1
jax: 0.10.0
libtpu: 0.0.40
codegen_flags: <defaults>
</compile_context>

<pallas_src>
import jax
import jax.numpy as jnp
from jax.experimental import pallas as pl
from jax.experimental.pallas import tpu as pltpu


def snake_beta_kernel(x_ref, p_ref, o_ref):
    # x_ref: (r_tile, t_tile) activation tile (input dtype)
    # p_ref: (r_tile, 2) f32 per-row params: [:, 0] = exp(alpha),
    #                                        [:, 1] = 1 / (exp(beta) + 1e-9)
    x = x_ref[...].astype(jnp.float32)
    a = p_ref[:, 0:1]       # (r_tile, 1), lane-broadcast
    inv_b = p_ref[:, 1:2]   # (r_tile, 1)
    s = jnp.sin(x * a)
    o_ref[...] = (x + (s * s) * inv_b).astype(o_ref.dtype)


def _choose_tiles(R, T, itemsize, block_bytes=4 * 1024 * 1024):
    """Byte-budgeted, dtype-aware tiles.

    Returned tiles are either the full axis (always legal) or a multiple of the
    packed sublane/lane base, so partial edge blocks under a cdiv grid are fine.
    """
    sub = {4: 8, 2: 16, 1: 32}.get(itemsize, 8)

    # Row (sublane) tile: full axis for small R, otherwise 256 (multiple of all
    # packing bases).
    r_tile = R if R <= 256 else 256

    # Time (lane) tile from the byte budget, rounded to 128 lanes.
    t_budget = max(128, ((block_bytes // (r_tile * itemsize)) // 128) * 128)
    t_tile = T if t_budget >= T else t_budget

    def nblocks(rt, tt):
        return pl.cdiv(R, rt) * pl.cdiv(T, tt)

    # Megacore (v7x: 2 TCs): ensure >= 2 blocks along a parallel axis when the
    # shape allows it. Prefer splitting time, then rows.
    while nblocks(r_tile, t_tile) < 2 and t_tile >= 256:
        t_tile = max(128, ((t_tile // 2) // 128) * 128)
    while nblocks(r_tile, t_tile) < 2 and r_tile >= 2 * sub:
        r_tile = max(sub, ((r_tile // 2) // sub) * sub)

    return r_tile, t_tile


def snake_beta(x, alpha, beta, *, block_bytes=4 * 1024 * 1024, alias_input=False):
    """x: (B, C, T); alpha, beta: (1, C, 1) raw (un-exponentiated) parameters."""
    B, C, T = x.shape
    dtype = x.dtype
    itemsize = jnp.dtype(dtype).itemsize
    R = B * C

    # Hoist per-channel parameter math out of the hot loop; keep in f32 so a
    # strongly negative beta (inv_b -> 1e9) doesn't lose precision in bf16.
    a_c = jnp.exp(alpha.astype(jnp.float32)).reshape(1, C)
    ib_c = 1.0 / (jnp.exp(beta.astype(jnp.float32)) + 1e-9)
    ib_c = ib_c.reshape(1, C)
    params = jnp.stack(
        [jnp.broadcast_to(a_c, (B, C)).reshape(R),
         jnp.broadcast_to(ib_c, (B, C)).reshape(R)],
        axis=-1,
    )  # (R, 2) f32

    x2 = x.reshape(R, T)

    r_tile, t_tile = _choose_tiles(R, T, itemsize, block_bytes)
    grid = (pl.cdiv(R, r_tile), pl.cdiv(T, t_tile))

    # Double-buffered in + out blocks plus the tiny param blocks, with margin.
    block_b = r_tile * t_tile * itemsize
    vmem_needed = 4 * block_b + 2 * (r_tile * 2 * 4) + (1 << 20)
    vmem_limit = int(min(max(vmem_needed, 32 * 1024 * 1024), 48 * 1024 * 1024))

    cost = pl.CostEstimate(
        flops=int(5 * R * T),
        transcendentals=int(R * T),
        bytes_accessed=int(2 * R * T * itemsize + R * 2 * 4),
    )

    kwargs = {}
    if alias_input:
        # Reuse x2's HBM buffer for the output (footprint win for long audio).
        kwargs["input_output_aliases"] = {0: 0}

    out = pl.pallas_call(
        snake_beta_kernel,
        out_shape=jax.ShapeDtypeStruct((R, T), dtype),
        grid=grid,
        in_specs=[
            pl.BlockSpec((r_tile, t_tile), lambda r, t: (r, t)),
            pl.BlockSpec((r_tile, 2), lambda r, t: (r, 0)),
        ],
        out_specs=pl.BlockSpec((r_tile, t_tile), lambda r, t: (r, t)),
        compiler_params=pltpu.CompilerParams(
            dimension_semantics=("parallel", "parallel"),
            vmem_limit_bytes=vmem_limit,
        ),
        cost_estimate=cost,
        **kwargs,
    )(x2, params)

    return out.reshape(B, C, T)


def _reference(x, alpha, beta):
    a = jnp.exp(alpha.astype(jnp.float32))
    b = jnp.exp(beta.astype(jnp.float32))
    xf = x.astype(jnp.float32)
    y = xf + 1.0 / (b + 1e-9) * jnp.sin(xf * a) ** 2
    return y.astype(x.dtype)


if __name__ == "__main__":
    key = jax.random.PRNGKey(0)

    # (B, C, T, dtype, atol): small module-consistent shape, a 128-multiple T
    # (exercises the aligned tiled path + multi-block parallel grid), a
    # non-128-multiple T (exercises the cdiv edge block), and a bf16 case
    # (exercises dtype-aware tiling).
    cases = [
        (2, 4, 16, jnp.float32, 1e-5),
        (2, 4, 384, jnp.float32, 1e-5),
        (1, 4, 200, jnp.float32, 1e-5),
        (2, 4, 384, jnp.bfloat16, 2e-2),
    ]

    for (B, C, T, dt, atol) in cases:
        kx, ka, kb, key = jax.random.split(key, 4)
        x = jax.random.normal(kx, (B, C, T), dtype=jnp.float32).astype(dt)
        alpha = 0.1 * jax.random.normal(ka, (1, C, 1), dtype=jnp.float32)
        beta = 0.1 * jax.random.normal(kb, (1, C, 1), dtype=jnp.float32)

        out = jax.block_until_ready(snake_beta(x, alpha, beta))
        ref = _reference(x, alpha, beta)

        assert out.shape == (B, C, T)
        assert jnp.allclose(
            out.astype(jnp.float32), ref.astype(jnp.float32), atol=atol, rtol=atol
        ), f"mismatch vs reference for shape {(B, C, T)} dtype {dt}"

    print("KERNEL_OK")
</pallas_src>

<mosaic_0001>
module attributes {stable_mosaic.version = 11 : i64} {
  func.func @snake_beta_kernel(%arg0: i32, %arg1: i32, %arg2: memref<8x16xf32, #tpu.memory_space<vmem>>, %arg3: memref<8x2xf32, #tpu.memory_space<vmem>>, %arg4: memref<8x16xf32, #tpu.memory_space<vmem>>) attributes {dimension_semantics = [#tpu.dimension_semantics<parallel>, #tpu.dimension_semantics<parallel>], iteration_bounds = array<i64: 1, 1>, scalar_prefetch = 0 : i64, scratch_operands = 0 : i64, tpu.core_type = #tpu.core_type<tc>, window_params = [{transform_indices = @transform_0, window_bounds = array<i64: 8, 16>}, {transform_indices = @transform_1, window_bounds = array<i64: 8, 2>}, {transform_indices = @transform_2, window_bounds = array<i64: 8, 16>}]} {
    %c0 = arith.constant 0 : index
    %c0_0 = arith.constant 0 : index
    %0 = vector.load %arg2[%c0, %c0_0] : memref<8x16xf32, #tpu.memory_space<vmem>>, vector<8x16xf32>
    %c0_1 = arith.constant 0 : index
    %c0_2 = arith.constant 0 : index
    %1 = vector.load %arg3[%c0_1, %c0_2] : memref<8x2xf32, #tpu.memory_space<vmem>>, vector<8x1xf32>
    %c0_3 = arith.constant 0 : index
    %c1 = arith.constant 1 : index
    %2 = vector.load %arg3[%c0_3, %c1] : memref<8x2xf32, #tpu.memory_space<vmem>>, vector<8x1xf32>
    %3 = vector.broadcast %1 : vector<8x1xf32> to vector<8x16xf32>
    %4 = arith.mulf %0, %3 : vector<8x16xf32>
    %5 = math.sin %4 : vector<8x16xf32>
    %6 = arith.mulf %5, %5 : vector<8x16xf32>
    %7 = vector.broadcast %2 : vector<8x1xf32> to vector<8x16xf32>
    %8 = arith.mulf %6, %7 : vector<8x16xf32>
    %9 = arith.addf %0, %8 : vector<8x16xf32>
    %c0_4 = arith.constant 0 : index
    %c0_5 = arith.constant 0 : index
    %10 = vector.load %arg4[%c0_4, %c0_5] : memref<8x16xf32, #tpu.memory_space<vmem>>, vector<8x16xf32>
    tpu.vector_store %arg4[%c0_4, %c0_5], %9 {strides = array<i32>} : memref<8x16xf32, #tpu.memory_space<vmem>>, vector<8x16xf32>,
    return
  }
  func.func @transform_0(%arg0: i32, %arg1: i32) -> (i32, i32) {
    %c0_i32 = arith.constant 0 : i32
    return %arg0, %arg1 : i32, i32
  }
  func.func @transform_1(%arg0: i32, %arg1: i32) -> (i32, i32) {
    %c0_i32 = arith.constant 0 : i32
    %c0_i32_0 = arith.constant 0 : i32
    return %arg0, %c0_i32 : i32, i32
  }
  func.func @transform_2(%arg0: i32, %arg1: i32) -> (i32, i32) {
    %c0_i32 = arith.constant 0 : i32
    return %arg0, %arg1 : i32, i32
  }
}

</mosaic_0001>

<bundles_post_ra>
// kernel: tpu_custom_call.1
= control target key start
LH: loop header
LB: loop body
LE: loop exit
PB: predicated region body
PF: predicated region fallthrough
CT: control target
= control target key end

     0   :  { %v192_v1 = vmov 0   ;;  %s250_s0 = inlined_call_operand.vmem [shape: f32[8,16], index: 0, kind: input, shape index: {}]   ;;  %s251_s1 = inlined_call_operand.vmem [shape: f32[8,2], index: 1, kind: input, shape index: {}]   ;;  %s252_s2 = inlined_call_operand.hbm [shape: f32[8,16], index: 2, kind: output, shape index: {}]  }
   0x1   :  { %v13_v0 = vld [vmem:[%s251_s1] sm:$0xff]  ;;  %164 = vset.pattern.permute.xlu0 %v192_v1 }
   0x2   :  { %16 = vperm.xlu0 %164, %v13_v0  }
   0x3   :  { %7 = vsyncpa [#allocation3], 0  ;;  %v193_v2 = vmov 1   ;;  %v222_v3 = vld [vmem:[%s250_s0] sm:$0xff]  ;;  %v194_v16 = vmov 683565275  }
   0x4   :  { %v195_v18 = vmov 2475754826   ;;  %v196_v21 = vmov 2131351028   ;;  %v197_v24 = vmov 2102212464  }
   0x5   :  { %v198_v27 = vmov 920167782   ;;  %v199_v30 = vmov 1326507024   ;;  %s200_s0 = smov [#allocation2]   ;;  %vm131_vm13 = vcmask 130048  }
   0x6   :  { %165 = vset.pattern.permute.xlu0 %v193_v2  ;;  %s139_s1 = sshll.u32 %s200_s0, 4  ;;  %s140_s1 = int_to_ptr.vmem [resolvable:$true] %s139_s1 }
   0x7   :  { %126 = vperm.xlu0 %165, %v13_v0   ;;  %s170_s13 = scalar_lea.vmem %s140_s1, 128  ;;  %p175_p1 = scmp.lt.s32.totalorder %s140_s1, %s140_s1 }
   0x8   :  { %p171_p0 = scmp.ne.s32.totalorder %s140_s1, %s170_s13  ;;  %p176_p2 = scmp.lt.s32.totalorder %s170_s13, %s170_s13 }
   0xa   :  { %p177_p3 = por %p176_p2, %p175_p1 }
   0xc   :  { %p178_p4 = pnand %p177_p3, %p171_p0 }
  0x7d   :  { %v17_v4 = vpop.permute.xlu0 %16 }
  0x7e   :  { %v225_v5 = vmul.f32 %v17_v4, %v222_v3 }
  0x80   :  { %v23_v6 = vand.u32 2139095040, %v225_v5  ;;  %v20_v10 = vand.u32 2147483647, %v225_v5  ;;  %vm22_vm7 = vcmp.lt.s32.totalorder %v225_v5, 0  ;;  %vm112_vm12 = vweird.f32 %v225_v5 }
  0x82   :  { %v24_v7 = vshrl.u32 %v23_v6, 23  ;;  %v27_v13 = vand.u32 8388607, %v20_v10  ;;  %vm21_vm8 = vcmp.le.f32.partialorder %v20_v10, 0.7853982 }
  0x84   :  { %v147_v8 = vadd.s32 4294967169, %v24_v7  ;;  %v28_v32 = vor.u32 8388608, %v27_v13 }
  0x86   :  { %v30_v9 = vadd.s32 1, %v147_v8  ;;  %v68_v46 = vshll.u32 %v28_v32, 8 }
  0x88   :  { %vm31_vm0 = vcmp.gt.s32.totalorder %v30_v9, 0 }
  0x89   :  { %v32_v11 = vsel %vm31_vm0, %v30_v9, 0 }
  0x8a   :  { %v34_v12 = vand.u32 31, %v32_v11  ;;  %v33_v15 = vshrl.u32 %v32_v11, 5 }
  0x8c   :  { %v35_v14 = vsub.s32 32, %v34_v12  ;;  %v37_v17 = vshll.u32 %v194_v16, %v34_v12  ;;  %v40_v19 = vshll.u32 %v195_v18, %v34_v12  ;;  %v43_v23 = vshll.u32 %v196_v21, %v34_v12 }
  0x8d   :  { %v46_v26 = vshll.u32 %v197_v24, %v34_v12  ;;  %v49_v29 = vshll.u32 %v198_v27, %v34_v12  ;;  %vm52_vm1 = vcmp.lt.s32.totalorder %v33_v15, 1  ;;  %vm55_vm2 = vcmp.lt.s32.totalorder %v33_v15, 4 }
  0x8e   :  { %v38_v20 = vshrl.u32 %v195_v18, %v35_v14  ;;  %v41_v22 = vshrl.u32 %v196_v21, %v35_v14  ;;  %v44_v25 = vshrl.u32 %v197_v24, %v35_v14  ;;  %v47_v28 = vshrl.u32 %v198_v27, %v35_v14 }
  0x8f   :  { %v50_v31 = vshrl.u32 %v199_v30, %v35_v14  ;;  %v36_v41 = vshrl.u32 %v194_v16, %v35_v14  ;;  %vm54_vm3 = vcmp.lt.s32.totalorder %v33_v15, 3  ;;  %vm53_vm4 = vcmp.lt.s32.totalorder %v33_v15, 2 }
  0x90   :  { %v39_v33 = vor.u32 %v38_v20, %v37_v17  ;;  %v42_v34 = vor.u32 %v41_v22, %v40_v19  ;;  %v45_v35 = vor.u32 %v44_v25, %v43_v23  ;;  %v48_v36 = vor.u32 %v47_v28, %v46_v26 }
  0x91   :  { %v51_v37 = vor.u32 %v50_v31, %v49_v29 }
  0x92   :  { %v57_v38 = vsel %vm55_vm2, %v45_v35, 2102212464  ;;  %v60_v39 = vsel %vm52_vm1, %v39_v33, %v42_v34  ;;  %v64_v40 = vsel %vm52_vm1, %v42_v34, %v45_v35  ;;  %v61_v42 = vsel %vm55_vm2, %v48_v36, 920167782 }
  0x93   :  { %v65_v43 = vsel %vm55_vm2, %v51_v37, 1326507024  ;;  %v62_v44 = vsel %vm54_vm3, %v45_v35, %v61_v42  ;;  %v56_v47 = vsel %vm52_vm1, %v36_v41, %v39_v33  ;;  %v58_v48 = vsel %vm54_vm3, %v42_v34, %v57_v38  ;;  %v127_v34 = vpop.permute.xlu0 %126 }
  0x94   :  { %v66_v45 = vsel %vm54_vm3, %v48_v36, %v65_v43  ;;  %v63_v49 = vsel %vm53_vm4, %v60_v39, %v62_v44  ;;  %v59_v55 = vsel %vm53_vm4, %v56_v47, %v58_v48 }
  0x95   :  { %v67_v50 = vsel %vm53_vm4, %v64_v40, %v66_v45  ;;  %v234_v53 = vmul.u32.u64.low %v68_v46, %v63_v49  ;;  %v235_v54 = vmul.u32.u64.high %v68_v46, %v63_v49, %v234_v53  ;;  %v75_v57 = vmul.u32 %v68_v46, %v59_v55 }
  0x96   :  { %v231_v51 = vmul.u32.u64.low %v68_v46, %v67_v50  ;;  %v232_v52 = vmul.u32.u64.high %v68_v46, %v67_v50, %v231_v51 }
  0x97   :  { %v78_v56 = vadd.s32 1, %v235_v54 }
  0x98   :  { %vm77_vm5 = vc.u32 %v232_v52, %v234_v53  ;;  %v76_v7 = vadd.s32 %v234_v53, %v232_v52 }
  0x99   :  { %v79_v58 = vsel %vm77_vm5, %v78_v56, %v235_v54 }
  0x9a   :  { %v80_v59 = vadd.s32 %v79_v58, %v75_v57 }
  0x9c   :  { %v81_v60 = vadd.s32 536870912, %v80_v59 }
  0x9e   :  { %v82_v61 = vshrl.u32 %v81_v60, 30 }
  0xa0   :  { %v83_v62 = vshll.u32 %v82_v61, 30  ;;  %v106_v21 = vsub.s32 4, %v82_v61 }
  0xa2   :  { %v84_v63 = vsub.s32 %v80_v59, %v83_v62  ;;  %v107_v24 = vsel %vm22_vm7, %v106_v21, %v82_v61 }
  0xa3   :  { %v109_v25 = vsel %vm21_vm8, 0, %v107_v24 }
  0xa4   :  { %v86_v0 = vsub.s32 0, %v84_v63  ;;  %v113_v26 = vadd.s32 3, %v109_v25 }
  0xa6   :  { %v148_v1 = vmin.u32 %v86_v0, %v84_v63  ;;  %v114_v27 = vand.u32 3, %v113_v26 }
  0xa8   :  { %v88_v2 = vclz %v148_v1  ;;  %vm119_vm9 = vcmp.eq.s32.totalorder %v114_v27, 2  ;;  %vm116_vm10 = vcmp.eq.s32.totalorder %v114_v27, 0  ;;  %vm115_vm11 = vcmp.lt.s32.totalorder %v114_v27, 2 }
  0xaa   :  { %v149_v4 = vadd.s32 4294967294, %v88_v2 }
  0xac   :  { %vm150_vm6 = vcmp.lt.s32.totalorder %v149_v4, 0 }
  0xad   :  { %v91_v6 = vsel %vm150_vm6, 0, %v149_v4 }
  0xae   :  { %v92_v8 = vsub.s32 32, %v91_v6  ;;  %v96_v9 = vsub.s32 4294967266, %v91_v6  ;;  %v93_v11 = vshll.u32 %v84_v63, %v91_v6 }
  0xb0   :  { %v94_v12 = vshrl.u32 %v76_v7, %v92_v8  ;;  %v97_v13 = vadd.s32 127, %v96_v9 }
  0xb2   :  { %v95_v14 = vor.u32 %v94_v12, %v93_v11  ;;  %v98_v15 = vshll.u32 %v97_v13, 23 }
  0xb4   :  { %v99_v16 = vor.u32 4788187, %v98_v15  ;;  %v102_v18 = vcvt.s32.f32 %v95_v14 }
  0xb6   :  { %v100_v17 = vand.u32 2147483647, %v99_v16 }
  0xb8   :  { %v103_v19 = vmul.f32 %v102_v18, %v100_v17 }
  0xba   :  { %v104_v20 = vxor.u32 2147483648, %v103_v19 }
  0xbc   :  { %v105_v22 = vsel %vm22_vm7, %v104_v20, %v103_v19 }
  0xbd   :  { %v108_v23 = vsel %vm21_vm8, %v225_v5, %v105_v22 }
  0xbe   :  { %166 = vcosq.f32 %v108_v23 }
  0xbf   :  { %168 = vsinq.f32 %v108_v23 }
  0xcb   :  { %v167_v28 = vpop.eup %166 }
  0xcc   :  { %v169_v29 = vpop.eup %168  ;;  %v120_v30 = vxor.u32 2147483648, %v167_v28 }
  0xcd   :  { %v117_v31 = vxor.u32 2147483648, %v169_v29 }
  0xce   :  { %v121_v32 = vsel %vm119_vm9, %v120_v30, %v169_v29 }
  0xcf   :  { %v118_v33 = vsel %vm116_vm10, %v167_v28, %v117_v31 }
  0xd0   :  { %v122_v10 = vsel %vm115_vm11, %v118_v33, %v121_v32 }
  0xd1   :  { %v123_v35 = vsel %vm112_vm12, nan, %v122_v10 }
  0xd2   :  { %v124_v36 = vmul.f32 %v123_v35, %v123_v35 }
  0xd4   :  { %v129_v37 = vmul.f32 %v127_v34, %v124_v36 }
  0xd6   :  { %v130_v38 = vadd.f32 %v129_v37, %v222_v3 }
  0xd8   :  { %132 = vst.msk [vmem:[#allocation2] sm:$0xff] %vm131_vm13, %v130_v38 }
  0xd9   :  { %181 = shalt.err (!%p178_p4)
}
  0xda   :  { %142 = dma.vmem_to_hbm [thread:$0]  %s140_s1, 128, %s252_s2, [#allocation3]  }
  0xdb   :  { %190 = dma.done.wait [#allocation3], 128  }
  0xdc   :  { %191 = vsyncadd [#allocation3], 4294967168 }
  0xdd   :  { %146 = vsyncpa [#allocation3], 1 }

</bundles_post_ra>
